<compile_context>
chip_gen: v5e
topology: v5e:2x2
jax: 0.10.0
libtpu: 0.0.40
codegen_flags: <defaults>
</compile_context>

<pallas_src>
import functools

import jax
import jax.numpy as jnp
from jax import lax
from jax.experimental import pallas as pl
from jax.experimental.pallas import tpu as pltpu


def _round_up(n: int, m: int) -> int:
    return ((n + m - 1) // m) * m


def _make_std_estimator_kernel(log_std_min: float, log_std_max: float):
    # Compile-time Python floats -> jaxpr literals (no captured array consts).
    mid = float(0.5 * (log_std_min + log_std_max))   # lo + 0.5*(hi-lo)
    half = float(0.5 * (log_std_max - log_std_min))  # 0.5*(hi-lo)

    def kernel(x_ref, w_ref, b_ref, log_std_ref, std_ref):
        x = x_ref[...]            # (block_b, in_dim)
        w = w_ref[...]            # (out_dim, in_dim)  -- PyTorch layout == MXU (M, K)
        b = b_ref[...]            # (out_dim, 1)
        # Lane-dense orientation: batch on the 128-lane axis. Contract x on its
        # feature dim (the classic q.k^T pattern) -> (out_dim, block_b).
        y_t = lax.dot_general(
            w, x,
            dimension_numbers=(((1,), (1,)), ((), ())),
            preferred_element_type=jnp.float32,
        ) + b                                   # (out_dim, block_b)
        t = jnp.tanh(y_t)                       # EUP, lane-dense
        log_std_t = mid + half * t              # single FMA-shaped VPU op
        std_t = jnp.exp(log_std_t)              # EUP, lane-dense
        # Transpose back on the XLU (own slot; overlaps EUP/VPU/stores) so the
        # stored layout matches the (B, out_dim) contract.
        log_std_ref[...] = log_std_t.T.astype(log_std_ref.dtype)
        std_ref[...] = std_t.T.astype(std_ref.dtype)

    return kernel


@functools.partial(jax.jit, static_argnames=("log_std_min", "log_std_max", "max_block_b"))
def std_estimator_forward(x, weight, bias, *, log_std_min=-20.0, log_std_max=2.0,
                          max_block_b=4096):
    """x: (B, input_dim) f32; weight: (output_dim, input_dim) f32 (PyTorch layout);
    bias: (output_dim,) f32. Returns (log_std, std), each (B, output_dim) f32."""
    B, in_dim = x.shape
    out_dim, in_dim_w = weight.shape
    assert in_dim == in_dim_w
    b_col = bias.reshape(out_dim, 1)   # lane-broadcast-able in the transposed orientation

    # Batch tiling:
    #  * B <= 1024: single block (standalone call is dispatch-bound here anyway).
    #  * B  > 1024: at least 2 grid steps (v7x megacore), tile a multiple of 128
    #    (sublane rule + fully used lane groups), capped at max_block_b rows so
    #    the double-buffered tiles stay well inside the raised VMEM limit.
    if B <= 1024:
        block_b = B
    else:
        block_b = min(max_block_b, _round_up(pl.cdiv(B, 2), 128))
    grid = (pl.cdiv(B, block_b),)

    kernel = _make_std_estimator_kernel(float(log_std_min), float(log_std_max))

    out_shape = (
        jax.ShapeDtypeStruct((B, out_dim), jnp.float32),
        jax.ShapeDtypeStruct((B, out_dim), jnp.float32),
    )
    log_std, std = pl.pallas_call(
        kernel,
        out_shape=out_shape,
        grid=grid,
        in_specs=[
            pl.BlockSpec((block_b, in_dim), lambda i: (i, 0)),   # x: tiled over batch (ragged last block ok)
            pl.BlockSpec((out_dim, in_dim), lambda i: (0, 0)),   # weight: VMEM-resident
            pl.BlockSpec((out_dim, 1), lambda i: (0, 0)),        # bias: VMEM-resident
        ],
        out_specs=(
            pl.BlockSpec((block_b, out_dim), lambda i: (i, 0)),
            pl.BlockSpec((block_b, out_dim), lambda i: (i, 0)),
        ),
        compiler_params=pltpu.CompilerParams(
            dimension_semantics=("parallel",),   # v7x: shard batch tiles over 2 TCs
            # Raise the scoped-VMEM cap (v5e default is 16 MiB) so the larger
            # double-buffered tiles (~14 MiB at block_b=4096, lane-padded) fit
            # with headroom on every generation (48 MiB < v7x's 64 MiB physical).
            vmem_limit_bytes=48 * 1024 * 1024,
        ),
    )(x, weight, b_col)
    return log_std, std


def _reference_forward(x, weight, bias, log_std_min, log_std_max):
    y = x @ weight.T + bias
    t = jnp.tanh(y)
    log_std = log_std_min + 0.5 * (log_std_max - log_std_min) * (t + 1.0)
    return log_std, jnp.exp(log_std)


if __name__ == "__main__":
    key = jax.random.PRNGKey(0)
    k_x, k_w, k_b, k_x2 = jax.random.split(key, 4)

    input_dim = 32
    output_dim = 16
    log_std_min, log_std_max = -20.0, 2.0

    # Deterministic init at PyTorch's default Linear scale.
    bound = 1.0 / float(jnp.sqrt(jnp.float32(input_dim)))
    weight = jax.random.uniform(
        k_w, (output_dim, input_dim), dtype=jnp.float32, minval=-bound, maxval=bound
    )
    bias = jax.random.uniform(
        k_b, (output_dim,), dtype=jnp.float32, minval=-bound, maxval=bound
    )

    # Case 1: small batch -> single block, grid of 1.
    batch = 8
    x = jax.random.normal(k_x, (batch, input_dim), dtype=jnp.float32)
    log_std, std = std_estimator_forward(
        x, weight, bias, log_std_min=log_std_min, log_std_max=log_std_max
    )
    jax.block_until_ready((log_std, std))
    ref_log_std, ref_std = _reference_forward(x, weight, bias, log_std_min, log_std_max)
    assert log_std.shape == (batch, output_dim) and std.shape == (batch, output_dim)
    assert jnp.allclose(log_std, ref_log_std, atol=1e-5, rtol=1e-5)
    assert jnp.allclose(std, ref_std, atol=1e-5, rtol=1e-5)

    # Case 2: larger non-multiple batch -> 2-step grid with a ragged final block
    # (exercises the clipped writeback path, no pad/slice anywhere).
    batch2 = 2500
    x2 = jax.random.normal(k_x2, (batch2, input_dim), dtype=jnp.float32)
    log_std2, std2 = std_estimator_forward(
        x2, weight, bias, log_std_min=log_std_min, log_std_max=log_std_max
    )
    jax.block_until_ready((log_std2, std2))
    ref_log_std2, ref_std2 = _reference_forward(x2, weight, bias, log_std_min, log_std_max)
    assert log_std2.shape == (batch2, output_dim) and std2.shape == (batch2, output_dim)
    assert jnp.allclose(log_std2, ref_log_std2, atol=1e-5, rtol=1e-5)
    assert jnp.allclose(std2, ref_std2, atol=1e-5, rtol=1e-5)

    print("KERNEL_OK")
</pallas_src>

<mosaic_0001>
module attributes {stable_mosaic.version = 11 : i64} {
  func.func @kernel(%arg0: i32, %arg1: memref<8x32xf32, #tpu.memory_space<vmem>>, %arg2: memref<16x32xf32, #tpu.memory_space<vmem>>, %arg3: memref<16x1xf32, #tpu.memory_space<vmem>>, %arg4: memref<8x16xf32, #tpu.memory_space<vmem>>, %arg5: memref<8x16xf32, #tpu.memory_space<vmem>>) attributes {dimension_semantics = [#tpu.dimension_semantics<parallel>], iteration_bounds = array<i64: 1>, scalar_prefetch = 0 : i64, scratch_operands = 0 : i64, tpu.core_type = #tpu.core_type<tc>, window_params = [{transform_indices = @transform_0, window_bounds = array<i64: 8, 32>}, {pipeline_mode = #tpu.pipeline_mode<synchronous>, transform_indices = @transform_1, window_bounds = array<i64: 16, 32>}, {pipeline_mode = #tpu.pipeline_mode<synchronous>, transform_indices = @transform_2, window_bounds = array<i64: 16, 1>}, {transform_indices = @transform_3, window_bounds = array<i64: 8, 16>}, {transform_indices = @transform_4, window_bounds = array<i64: 8, 16>}]} {
    %c0 = arith.constant 0 : index
    %c0_0 = arith.constant 0 : index
    %0 = vector.load %arg1[%c0, %c0_0] : memref<8x32xf32, #tpu.memory_space<vmem>>, vector<8x32xf32>
    %c0_1 = arith.constant 0 : index
    %c0_2 = arith.constant 0 : index
    %1 = vector.load %arg2[%c0_1, %c0_2] : memref<16x32xf32, #tpu.memory_space<vmem>>, vector<16x32xf32>
    %c0_3 = arith.constant 0 : index
    %c0_4 = arith.constant 0 : index
    %2 = vector.load %arg3[%c0_3, %c0_4] : memref<16x1xf32, #tpu.memory_space<vmem>>, vector<16x1xf32>
    %cst = arith.constant dense<0.000000e+00> : vector<16x8xf32>
    %3 = tpu.matmul %1, %0, %cst {dimension_numbers = #tpu.dot_dimension_numbers<[1], [1], [0], [0], [0, 0, 1, 0], [], []>} : vector<16x32xf32>, vector<8x32xf32>, vector<16x8xf32> -> vector<16x8xf32>
    %4 = vector.broadcast %2 : vector<16x1xf32> to vector<16x8xf32>
    %5 = arith.addf %3, %4 : vector<16x8xf32>
    %6 = math.tanh %5 : vector<16x8xf32>
    %cst_5 = arith.constant 1.100000e+01 : f32
    %7 = vector.broadcast %cst_5 : f32 to vector<16x8xf32>
    %8 = arith.mulf %7, %6 : vector<16x8xf32>
    %cst_6 = arith.constant -9.000000e+00 : f32
    %9 = vector.broadcast %cst_6 : f32 to vector<16x8xf32>
    %10 = arith.addf %9, %8 : vector<16x8xf32>
    %11 = math.exp %10 : vector<16x8xf32>
    %12 = tpu.transpose %10, [1, 0] : vector<16x8xf32> -> vector<8x16xf32>
    %c0_7 = arith.constant 0 : index
    %c0_8 = arith.constant 0 : index
    %13 = vector.load %arg4[%c0_7, %c0_8] : memref<8x16xf32, #tpu.memory_space<vmem>>, vector<8x16xf32>
    tpu.vector_store %arg4[%c0_7, %c0_8], %12 {strides = array<i32>} : memref<8x16xf32, #tpu.memory_space<vmem>>, vector<8x16xf32>,
    %14 = tpu.transpose %11, [1, 0] : vector<16x8xf32> -> vector<8x16xf32>
    %c0_9 = arith.constant 0 : index
    %c0_10 = arith.constant 0 : index
    %15 = vector.load %arg5[%c0_9, %c0_10] : memref<8x16xf32, #tpu.memory_space<vmem>>, vector<8x16xf32>
    tpu.vector_store %arg5[%c0_9, %c0_10], %14 {strides = array<i32>} : memref<8x16xf32, #tpu.memory_space<vmem>>, vector<8x16xf32>,
    return
  }
  func.func @transform_0(%arg0: i32) -> (i32, i32) {
    %c0_i32 = arith.constant 0 : i32
    %c0_i32_0 = arith.constant 0 : i32
    return %arg0, %c0_i32 : i32, i32
  }
  func.func @transform_1(%arg0: i32) -> (i32, i32) {
    %c0_i32 = arith.constant 0 : i32
    %c0_i32_0 = arith.constant 0 : i32
    %c0_i32_1 = arith.constant 0 : i32
    return %c0_i32, %c0_i32_0 : i32, i32
  }
  func.func @transform_2(%arg0: i32) -> (i32, i32) {
    %c0_i32 = arith.constant 0 : i32
    %c0_i32_0 = arith.constant 0 : i32
    %c0_i32_1 = arith.constant 0 : i32
    return %c0_i32, %c0_i32_0 : i32, i32
  }
  func.func @transform_3(%arg0: i32) -> (i32, i32) {
    %c0_i32 = arith.constant 0 : i32
    %c0_i32_0 = arith.constant 0 : i32
    return %arg0, %c0_i32 : i32, i32
  }
  func.func @transform_4(%arg0: i32) -> (i32, i32) {
    %c0_i32 = arith.constant 0 : i32
    %c0_i32_0 = arith.constant 0 : i32
    return %arg0, %c0_i32 : i32, i32
  }
}

</mosaic_0001>

<bundles_post_ra>
// kernel: std_estimator_forward.1
= control target key start
LH: loop header
LB: loop body
LE: loop exit
PB: predicated region body
PF: predicated region fallthrough
CT: control target
= control target key end

     0   :  { %10 = vsyncpa [#allocation3], 0  ;;  %s336_s0 = inlined_call_operand.hbm [shape: f32[8,32], index: 0, kind: input, shape index: {}]   ;;  %s337_s1 = inlined_call_operand.vmem [shape: f32[16,32], index: 1, kind: input, shape index: {}]   ;;  %s338_s2 = inlined_call_operand.vmem [shape: f32[16,1], index: 2, kind: input, shape index: {}]   ;;  %s339_s3 = inlined_call_operand.hbm [shape: f32[8,16], index: 3, kind: output, shape index: {0}]   ;;  %s340_s4 = inlined_call_operand.hbm [shape: f32[8,16], index: 4, kind: output, shape index: {1}]  }
   0x1   :  { %11 = vsyncpa [#allocation4], 0 }
   0x2   :  { %12 = vsyncpa [#allocation7], 0  ;;  %s18_s17 = sshll.u32 %s336_s0, 4  ;;  %s286_s18 = smov [#allocation2]   ;;  %s19_s17 = int_to_ptr.hbm [resolvable:$true] %s18_s17 }
   0x3   :  { %s20_s19 = sshll.u32 %s286_s18, 4  ;;  %s21_s19 = int_to_ptr.vmem [resolvable:$true] %s20_s19 }
   0x4   :  { %23 = dma.hbm_to_vmem [thread:$0]  %s19_s17, 128, %s21_s19, [#allocation3]  }
   0x5   :  { %280 = dma.done.wait [#allocation3], 128  }
   0x6   :  { %281 = vsyncadd [#allocation3], 4294967168  ;;  %v287_v0 = vmov 0   ;;  %vm47_vm0 = vcmask 261120   ;;  %v32_v1 = vld [vmem:[#allocation2] sm:$0xff]  ;;  %v34_v3 = vld [vmem:[%s337_s1 + $0x8] sm:$0xff] }
   0x7   :  { %199 = vset.pattern.permute.xlu0 %v287_v0  ;;  %190 = vmatpush.xpose.msk.msra.mxu0 %vm47_vm0, %v32_v1  ;;  %v33_v2 = vld [vmem:[%s337_s1] sm:$0xff]  ;;  %v36_v5 = vld [vmem:[%s338_s2 + $0x8] sm:$0xff]  ;;  %s288_s1 = smov [#allocation6]   ;;  %s175_s29 = sshll.u32 %s340_s4, 4  ;;  %vm122_vm1 = vcmask 130048   ;;  %s176_s29 = int_to_ptr.hbm [resolvable:$true] %s175_s29 }
   0x8   :  { %193 = vmatpush.xpose.msk.msra.mxu1 %vm47_vm0, %v32_v1  ;;  %v35_v4 = vld [vmem:[%s338_s2] sm:$0xff]  ;;  %s173_s2 = sshll.u32 %s288_s1, 4  ;;  %s289_s30 = smov [#allocation5]   ;;  %s174_s2 = int_to_ptr.vmem [resolvable:$true] %s173_s2 }
   0x9   :  { %39 = vperm.xlu0 %199, %v35_v4   ;;  %s162_s5 = sshll.u32 %s289_s30, 4  ;;  %s164_s8 = sshll.u32 %s339_s3, 4  ;;  %s163_s5 = int_to_ptr.vmem [resolvable:$true] %s162_s5  ;;  %s165_s8 = int_to_ptr.hbm [resolvable:$true] %s164_s8 }
   0xa   :  { %191 = vmatmul.msk.f32.vlgmr.msra.gmra.mxu0 %vm47_vm0, %v33_v2 }
   0xb   :  { %192 = vmatmul.msk.f32.vlgmr.msra.gmra.mxu1 %vm47_vm0, %v34_v3 }
  0x11   :  { %44 = vperm.xlu0 %199, %v36_v5  }
  0x7b   :  { %v40_v6 = vpop.permute.xlu0 %39 }
  0x83   :  { %v45_v7 = vpop.permute.xlu0 %44 }
  0x87   :  { %v74_v8 = vpop.f32.mrf.mxu0 }
  0x88   :  { %v77_v9 = vpop.f32.mrf.mxu1  ;;  %v75_v10 = vadd.f32 %v74_v8, %v40_v6 }
  0x89   :  { %v78_v11 = vadd.f32 %v77_v9, %v45_v7 }
  0x8a   :  { %200 = vtanh.f32 %v75_v10 }
  0x8b   :  { %202 = vtanh.f32 %v78_v11 }
  0x90   :  { %v201_v12 = vpop.eup %200 }
  0x91   :  { %v203_v13 = vpop.eup %202  ;;  %v82_v14 = vmul.f32 11.0, %v201_v12 }
  0x92   :  { %v83_v16 = vmul.f32 11.0, %v203_v13 }
  0x93   :  { %v84_v15 = vadd.f32 -9.0, %v82_v14 }
  0x94   :  { %v85_v18 = vadd.f32 -9.0, %v83_v16 }
  0x95   :  { %90 = vxpose.xlu1.b32.start [1/2] (short) (narrow) %v84_v15, 8  ;;  %v86_v17 = vmul.f32 1.442695, %v84_v15 }
  0x96   :  { %v88_v19 = vmul.f32 1.442695, %v85_v18 }
  0x97   :  { %204 = vpow2.f32 %v86_v17 }
  0x98   :  { %206 = vpow2.f32 %v88_v19 }
  0x9d   :  { %v205_v20 = vpop.eup %204  ;;  %91 = vxpose.xlu1.b32.end [2/2] (short) (narrow) %v85_v18, 8 }
  0x9e   :  { %124 = vxpose.xlu2.b32.start [1/2] (short) (narrow) %v205_v20, 8  ;;  %v207_v21 = vpop.eup %206 }
  0xa6   :  { %125 = vxpose.xlu2.b32.end [2/2] (short) (narrow) %v207_v21, 8 }
 0x137   :  { %v140_v22 = vpop.trf.xlu2 }
 0x138   :  { %156 = vst.msk [vmem:[#allocation6] sm:$0xff] %vm122_vm1, %v140_v22 }
 0x139   :  { %v106_v23 = vpop.trf.xlu1  ;;  %178 = dma.vmem_to_hbm [thread:$0]  %s174_s2, 128, %s176_s29, [#allocation7]  }
 0x13a   :  { %123 = vst.msk [vmem:[#allocation5] sm:$0xff] %vm122_vm1, %v106_v23 }
 0x13b   :  { %167 = dma.vmem_to_hbm [thread:$0]  %s163_s5, 128, %s165_s8, [#allocation4]  }
 0x13c   :  { %282 = dma.done.wait [#allocation4], 128  }
 0x13d   :  { %283 = vsyncadd [#allocation4], 4294967168 }
 0x13e   :  { %284 = dma.done.wait [#allocation7], 128  }
 0x13f   :  { %285 = vsyncadd [#allocation7], 4294967168 }
 0x140   :  { %187 = vsyncpa [#allocation3], 1 }
 0x141   :  { %188 = vsyncpa [#allocation4], 1 }
 0x142   :  { %189 = vsyncpa [#allocation7], 1 }

</bundles_post_ra>
